<compile_context>
chip_gen: v7x
topology: tpu7x:2x2x1
jax: 0.10.0
libtpu: 0.0.40
codegen_flags: <defaults>
</compile_context>

<pallas_src>
import jax
import jax.numpy as jnp
from jax import lax
from jax.experimental import pallas as pl
from jax.experimental.pallas import tpu as pltpu


def _tile(dim, target, align=1):
    """Largest divisor of `dim` that is <= target, preferring multiples of `align`.

    Never falls back to the full `dim` when dim > target (that could request a block far
    larger than VMEM)."""
    if dim <= target:
        return dim
    best_any = 1
    for t in range(min(target, dim), 0, -1):
        if dim % t == 0:
            if t % align == 0:
                return t
            if best_any == 1:
                best_any = t
    # TODO(synk): if no aligned divisor exists the (8,128) tiling rule may require padding the
    # array upstream; we return the best unaligned divisor here.
    return best_any


def _vmem_capacity_bytes():
    try:
        return pltpu.get_tpu_info().vmem_capacity_bytes
    except Exception:
        return 128 * 1024 * 1024


def _default_mlp_s_tile():
    # v7x has 64 MiB physical VMEM per TensorCore -> use a smaller MLP S-tile there.
    return 128 if _vmem_capacity_bytes() <= 64 * 1024 * 1024 else 256


# ----------------------------------------------------------------------------
# Pallas kernel 1: fused squared-distance + streaming top-K neighbor selection.
# Emits only the [B, S, K] int32 neighbor indices; the [B,S,N] distance matrix
# never leaves VMEM.
# ----------------------------------------------------------------------------
def knn_pallas(queries, points, k, *, s_tile_target=256, n_tile_target=2048):
    """For every query (row of `queries`) return indices of its k nearest `points` (sq. L2)."""
    B, S, _ = queries.shape
    _, N, _ = points.shape
    tS = _tile(S, s_tile_target, align=8)
    tN = _tile(N, n_tile_target, align=8)
    n_steps = N // tN

    def kernel(q_ref, p_ref, idx_ref, best_d_ref, best_i_ref):
        ni = pl.program_id(2)

        @pl.when(ni == 0)
        def _init():
            best_d_ref[...] = jnp.full(best_d_ref.shape, jnp.inf, jnp.float32)
            best_i_ref[...] = jnp.zeros(best_i_ref.shape, jnp.int32)

        q = q_ref[0]                                    # [tS, 3] f32
        p = p_ref[0]                                    # [tN, 3] f32
        # score = ||q - p||^2 - ||q||^2 = ||p||^2 - 2 q.p
        # (the per-query constant is dropped; ordering is identical, and the reference's
        #  square_distance uses the same -2ab + a^2 + b^2 decomposition).
        s = lax.dot_general(q, p, dimension_numbers=(((1,), (1,)), ((), ())),
                            preferred_element_type=jnp.float32)          # [tS, tN]
        s = jnp.sum(p * p, axis=-1)[None, :] - 2.0 * s

        cand = lax.broadcasted_iota(jnp.int32, s.shape, 1) + ni * tN     # global indices
        work_d = jnp.concatenate([best_d_ref[...], s], axis=-1)          # [tS, k+tN]
        work_i = jnp.concatenate([best_i_ref[...], cand], axis=-1)
        col = lax.broadcasted_iota(jnp.int32, work_d.shape, 1)
        ncol = work_d.shape[-1]

        # Select the k smallest (value, index) pairs: min -> record -> mask, k times.
        for j in range(k):                                              # k is small & static
            m = jnp.min(work_d, axis=-1, keepdims=True)                 # [tS, 1]
            pos = jnp.min(jnp.where(work_d == m, col, ncol), axis=-1, keepdims=True)
            hit = col == pos
            sel = jnp.sum(jnp.where(hit, work_i, 0), axis=-1, keepdims=True)
            best_d_ref[:, j:j + 1] = m
            best_i_ref[:, j:j + 1] = sel
            work_d = jnp.where(hit, jnp.inf, work_d)

        @pl.when(ni == n_steps - 1)
        def _emit():
            idx_ref[0] = best_i_ref[...]

    return pl.pallas_call(
        kernel,
        out_shape=jax.ShapeDtypeStruct((B, S, k), jnp.int32),
        grid=(B, S // tS, n_steps),
        in_specs=[
            pl.BlockSpec((1, tS, 3), lambda bi, si, ni: (bi, si, 0)),
            pl.BlockSpec((1, tN, 3), lambda bi, si, ni: (bi, ni, 0)),
        ],
        out_specs=pl.BlockSpec((1, tS, k), lambda bi, si, ni: (bi, si, 0)),
        scratch_shapes=[
            pltpu.VMEM((tS, k), jnp.float32),   # running best scores
            pltpu.VMEM((tS, k), jnp.int32),     # running best indices
        ],
        compiler_params=pltpu.CompilerParams(
            dimension_semantics=("parallel", "parallel", "arbitrary")),
    )(queries, points)


# ----------------------------------------------------------------------------
# Pallas kernel 2: shared pointwise MLP (1x1 conv + folded BN + ReLU) + max over K.
# Two bf16 input streams (xyz-norm / features); layer-0 weight split in the wrapper
# so the concat happens on the MXU.  f32 accumulation / elementwise math.
# ----------------------------------------------------------------------------
def mlp_max_pallas(grouped_xyz_norm, grouped_points, params, *, s_tile_target=None):
    """grouped_xyz_norm: [B,S,K,3] bf16, grouped_points: [B,S,K,D] bf16 -> [B,S,Cout] f32."""
    B, S, K, _ = grouped_xyz_norm.shape
    D = grouped_points.shape[-1]
    if s_tile_target is None:
        s_tile_target = _default_mlp_s_tile()
    tS = _tile(S, s_tile_target, align=8)

    # Free row-major merges in HBM: the kernel blocks on (1, tS*K, C) and never relayouts.
    gx = grouped_xyz_norm.reshape(B, S * K, 3)
    gp = grouped_points.reshape(B, S * K, D)

    # Pad the LAST layer to a lane-dense (multiple-of-128) output width: relu(0 + 0) == 0 in
    # padded columns, so max-over-K there is 0 and the wrapper slices it back off.
    params = [(W, b) for (W, b) in params]
    Dout = params[-1][0].shape[1]
    Cpad = max(128, pl.cdiv(Dout, 128) * 128)
    if Cpad != Dout:
        Wl, bl = params[-1]
        params[-1] = (jnp.pad(Wl, ((0, 0), (0, Cpad - Dout))),
                      jnp.pad(bl, ((0, 0), (0, Cpad - Dout))))

    # Split layer 0 into xyz / feature halves (implicit concat on the MXU).
    W0, b0 = params[0]
    flat = [W0[:3].astype(jnp.bfloat16), W0[3:].astype(jnp.bfloat16), b0.astype(jnp.float32)]
    for (W, b) in params[1:]:
        flat.append(W.astype(jnp.bfloat16))
        flat.append(b.astype(jnp.float32))
    n_rest = len(params) - 1

    def kernel(gx_ref, gp_ref, *refs):
        out_ref = refs[-1]
        prefs = refs[:-1]
        # Layer 0: split matmul == matmul of the concatenated [xyz_norm | feats] input.
        z = jnp.dot(gx_ref[0], prefs[0][...], preferred_element_type=jnp.float32)
        z = z + jnp.dot(gp_ref[0], prefs[1][...], preferred_element_type=jnp.float32)
        h = jnp.maximum(z + prefs[2][...], 0.0)         # folded conv-bias/BN + ReLU (f32 VPU)
        for l in range(n_rest):                         # small static layer count
            W = prefs[3 + 2 * l][...]
            b = prefs[4 + 2 * l][...]
            z = jnp.dot(h.astype(jnp.bfloat16), W, preferred_element_type=jnp.float32)
            h = jnp.maximum(z + b, 0.0)
        # Rows are S-major (groups of K consecutive neighbors); max over K, lane-dense store.
        out_ref[0] = jnp.max(h.reshape(tS, K, h.shape[-1]), axis=1)

    in_specs = [
        pl.BlockSpec((1, tS * K, 3), lambda bi, si: (bi, si, 0)),
        pl.BlockSpec((1, tS * K, D), lambda bi, si: (bi, si, 0)),
    ]
    for p in flat:
        # Grid-invariant parameters: single-buffered to halve their VMEM footprint.
        in_specs.append(pl.BlockSpec(p.shape, lambda bi, si: (0, 0),
                                     pipeline_mode=pl.Buffered(1)))

    out = pl.pallas_call(
        kernel,
        out_shape=jax.ShapeDtypeStruct((B, S, Cpad), jnp.float32),
        grid=(B, S // tS),
        in_specs=in_specs,
        out_specs=pl.BlockSpec((1, tS, Cpad), lambda bi, si: (bi, si, 0)),
        compiler_params=pltpu.CompilerParams(
            dimension_semantics=("parallel", "parallel")),
    )(gx, gp, *flat)
    return out[..., :Dout] if Cpad != Dout else out


# ----------------------------------------------------------------------------
# Plain-JAX glue (sampling / gathers)
# ----------------------------------------------------------------------------
def farthest_point_sample(xyz, npoint):
    # xyz: [B, N, 3] -> centroid indices [B, npoint]
    # TODO(synk): torch seeds `farthest` with torch.randint; we start at index 0 for determinism.
    # TODO(synk): could be a single Pallas kernel keeping xyz and the running distance resident
    # in VMEM (removes npoint x HBM round-trips); kept in plain JAX here.
    B, N, _ = xyz.shape

    def body(i, state):
        distance, farthest, centroids = state
        centroids = centroids.at[:, i].set(farthest)
        centroid = jnp.take_along_axis(xyz, farthest[:, None, None], axis=1)  # [B,1,3]
        dist = jnp.sum((xyz - centroid) ** 2, axis=-1)                        # [B,N]
        distance = jnp.minimum(distance, dist)
        farthest = jnp.argmax(distance, axis=-1).astype(jnp.int32)
        return distance, farthest, centroids

    distance = jnp.full((B, N), 1e10, dtype=xyz.dtype)
    farthest = jnp.zeros((B,), dtype=jnp.int32)
    centroids = jnp.zeros((B, npoint), dtype=jnp.int32)
    _, _, centroids = lax.fori_loop(0, npoint, body, (distance, farthest, centroids))
    return centroids


def _gather_points(x, idx):
    # x: [B, N, C], idx: [B, S, K] -> [B, S, K, C]
    return jax.vmap(lambda xb, ib: xb[ib])(x, idx)


def transition_down(xyz, points, mlp_params, npoint, nsample):
    """xyz: [B, N, 3], points: [B, N, D] -> (new_xyz [B, S, 3], new_feats [B, S, C_out])."""
    fps_idx = farthest_point_sample(xyz, npoint)                               # [B, S]
    new_xyz = jnp.take_along_axis(xyz, fps_idx[:, :, None], axis=1)            # [B, S, 3]

    idx = knn_pallas(new_xyz, xyz, nsample)                                    # [B, S, K] (Pallas)

    grouped_xyz = _gather_points(xyz, idx)                                     # [B,S,K,3] f32 (tiny)
    grouped_xyz_norm = (grouped_xyz - new_xyz[:, :, None, :]).astype(jnp.bfloat16)
    grouped_points = _gather_points(points.astype(jnp.bfloat16), idx)          # gather bf16 feats
    # TODO(synk): the neighbor gather itself could be folded into the MLP kernel (scalar-prefetch
    # idx + manual DMA gather from HBM); kept as an XLA gather here.

    new_feats = mlp_max_pallas(grouped_xyz_norm, grouped_points, mlp_params)   # [B,S,Cout] (Pallas)
    return new_xyz, new_feats


# ----------------------------------------------------------------------------
# Deterministic parameter init: Conv2d(1x1) weight/bias + eval-mode BatchNorm2d stats,
# folded into a single (W', b') per layer:  relu(((x@W+b)*scale)+shift) == relu(x@W' + b').
# ----------------------------------------------------------------------------
def init_params(key, channels, eps=1e-5):
    params = []
    last = channels[0]
    for out_c in channels[1:]:
        key, k1, k2, k3, k4, k5, k6 = jax.random.split(key, 7)
        W = 0.1 * jax.random.normal(k1, (last, out_c), jnp.float32)            # conv weight (in, out)
        b = 0.1 * jax.random.normal(k2, (1, out_c), jnp.float32)               # conv bias
        gamma = 1.0 + 0.1 * jax.random.normal(k3, (1, out_c), jnp.float32)
        beta = 0.1 * jax.random.normal(k4, (1, out_c), jnp.float32)
        rmean = 0.1 * jax.random.normal(k5, (1, out_c), jnp.float32)
        rvar = 1.0 + 0.1 * jnp.abs(jax.random.normal(k6, (1, out_c), jnp.float32))
        scale = gamma / jnp.sqrt(rvar + eps)
        shift = beta - rmean * scale
        params.append((W * scale, b * scale + shift))
        last = out_c
    return params


if __name__ == "__main__":
    # Small shapes consistent with TransitionDown(k, nneighbor, channels):
    #   k (npoint) = 8, nneighbor = 8, channels = [3 + D, 32, 32] with D = 16 point features.
    B, N, D = 2, 16, 16
    npoint, nneighbor = 8, 8
    channels = [3 + D, 32, 32]

    key = jax.random.PRNGKey(0)
    kxyz, kpts, kparam = jax.random.split(key, 3)
    xyz = jax.random.normal(kxyz, (B, N, 3), jnp.float32)
    points = jax.random.normal(kpts, (B, N, D), jnp.float32)
    params = init_params(kparam, channels)

    new_xyz, new_feats = transition_down(xyz, points, params, npoint, nneighbor)
    jax.block_until_ready((new_xyz, new_feats))

    assert new_xyz.shape == (B, npoint, 3)
    assert new_feats.shape == (B, npoint, channels[-1])
    assert jnp.all(jnp.isfinite(new_xyz)) and jnp.all(jnp.isfinite(new_feats))

    # Light correctness check: pure-JAX f32 MLP+max reference using the kernel's own indices.
    fps_idx = farthest_point_sample(xyz, npoint)
    ref_xyz = jnp.take_along_axis(xyz, fps_idx[:, :, None], axis=1)
    idx = knn_pallas(ref_xyz, xyz, nneighbor)
    feats = jnp.concatenate([_gather_points(xyz, idx) - ref_xyz[:, :, None, :],
                             _gather_points(points, idx)], axis=-1)
    h = feats
    for (W, b) in params:
        h = jnp.maximum(jnp.einsum('bskc,cd->bskd', h, W) + b, 0.0)
    ref_feats = jnp.max(h, axis=2)
    assert jnp.allclose(new_xyz, ref_xyz)
    assert jnp.allclose(new_feats, ref_feats, atol=5e-2, rtol=5e-2), \
        float(jnp.max(jnp.abs(new_feats - ref_feats)))

    print("KERNEL_OK")
</pallas_src>

<mosaic_0001>
module attributes {stable_mosaic.version = 11 : i64} {
  func.func @kernel(%arg0: i32, %arg1: i32, %arg2: i32, %arg3: memref<1x8x3xf32, #tpu.memory_space<vmem>>, %arg4: memref<1x16x3xf32, #tpu.memory_space<vmem>>, %arg5: memref<1x8x8xi32, #tpu.memory_space<vmem>>, %arg6: memref<8x8xf32, #tpu.memory_space<vmem>>, %arg7: memref<8x8xi32, #tpu.memory_space<vmem>>) attributes {dimension_semantics = [#tpu.dimension_semantics<parallel>, #tpu.dimension_semantics<parallel>, #tpu.dimension_semantics<arbitrary>], iteration_bounds = array<i64: 2, 1, 1>, scalar_prefetch = 0 : i64, scratch_operands = 2 : i64, tpu.core_type = #tpu.core_type<tc>, window_params = [{transform_indices = @transform_0, window_bounds = array<i64: 1, 8, 3>}, {transform_indices = @transform_1, window_bounds = array<i64: 1, 16, 3>}, {transform_indices = @transform_2, window_bounds = array<i64: 1, 8, 8>}]} {
    %c0_i32 = arith.constant 0 : i32
    %0 = arith.cmpi eq, %arg2, %c0_i32 : i32
    %1 = arith.extui %0 : i1 to i32
    %c0_i32_0 = arith.constant 0 : i32
    %2 = arith.cmpi ne, %1, %c0_i32_0 : i32
    scf.if %2 {
      %cst_85 = arith.constant 0x7F800000 : f32
      %169 = vector.broadcast %cst_85 : f32 to vector<8x8xf32>
      %c0_86 = arith.constant 0 : index
      %c0_87 = arith.constant 0 : index
      %170 = vector.load %arg6[%c0_86, %c0_87] : memref<8x8xf32, #tpu.memory_space<vmem>>, vector<8x8xf32>
      tpu.vector_store %arg6[%c0_86, %c0_87], %169 {strides = array<i32>} : memref<8x8xf32, #tpu.memory_space<vmem>>, vector<8x8xf32>,
      %c0_i32_88 = arith.constant 0 : i32
      %171 = vector.broadcast %c0_i32_88 : i32 to vector<8x8xi32>
      %c0_89 = arith.constant 0 : index
      %c0_90 = arith.constant 0 : index
      %172 = vector.load %arg7[%c0_89, %c0_90] : memref<8x8xi32, #tpu.memory_space<vmem>>, vector<8x8xi32>
      tpu.vector_store %arg7[%c0_89, %c0_90], %171 {strides = array<i32>} : memref<8x8xi32, #tpu.memory_space<vmem>>, vector<8x8xi32>,
    } else {
    }
    %c0 = arith.constant 0 : index
    %c0_1 = arith.constant 0 : index
    %c0_2 = arith.constant 0 : index
    %3 = vector.load %arg3[%c0, %c0_1, %c0_2] : memref<1x8x3xf32, #tpu.memory_space<vmem>>, vector<1x8x3xf32>
    %4 = vector.shape_cast %3 : vector<1x8x3xf32> to vector<8x3xf32>
    %c0_3 = arith.constant 0 : index
    %c0_4 = arith.constant 0 : index
    %c0_5 = arith.constant 0 : index
    %5 = vector.load %arg4[%c0_3, %c0_4, %c0_5] : memref<1x16x3xf32, #tpu.memory_space<vmem>>, vector<1x16x3xf32>
    %6 = vector.shape_cast %5 : vector<1x16x3xf32> to vector<16x3xf32>
    %cst = arith.constant dense<0.000000e+00> : vector<8x16xf32>
    %7 = tpu.matmul %4, %6, %cst {dimension_numbers = #tpu.dot_dimension_numbers<[1], [1], [0], [0], [0, 0, 1, 0], [], []>} : vector<8x3xf32>, vector<16x3xf32>, vector<8x16xf32> -> vector<8x16xf32>
    %8 = arith.mulf %6, %6 : vector<16x3xf32>
    %cst_6 = arith.constant dense<0.000000e+00> : vector<16xf32>
    %9 = vector.multi_reduction <add>, %8, %cst_6 [1] : vector<16x3xf32> to vector<16xf32>
    %10 = vector.shape_cast %9 : vector<16xf32> to vector<1x16xf32>
    %cst_7 = arith.constant 2.000000e+00 : f32
    %11 = vector.broadcast %cst_7 : f32 to vector<8x16xf32>
    %12 = arith.mulf %11, %7 : vector<8x16xf32>
    %13 = vector.broadcast %10 : vector<1x16xf32> to vector<8x16xf32>
    %14 = arith.subf %13, %12 : vector<8x16xf32>
    %15 = tpu.iota {dimensions = array<i32: 1>} : vector<8x16xi32>
    %c16_i32 = arith.constant 16 : i32
    %16 = arith.muli %arg2, %c16_i32 : i32
    %17 = vector.broadcast %16 : i32 to vector<8x16xi32>
    %18 = arith.addi %15, %17 : vector<8x16xi32>
    %c0_8 = arith.constant 0 : index
    %c0_9 = arith.constant 0 : index
    %19 = vector.load %arg6[%c0_8, %c0_9] : memref<8x8xf32, #tpu.memory_space<vmem>>, vector<8x8xf32>
    %20 = tpu.concatenate %19, %14 in 1 : vector<8x8xf32>, vector<8x16xf32> -> vector<8x24xf32>
    %c0_10 = arith.constant 0 : index
    %c0_11 = arith.constant 0 : index
    %21 = vector.load %arg7[%c0_10, %c0_11] : memref<8x8xi32, #tpu.memory_space<vmem>>, vector<8x8xi32>
    %22 = tpu.concatenate %21, %18 in 1 : vector<8x8xi32>, vector<8x16xi32> -> vector<8x24xi32>
    %23 = tpu.iota {dimensions = array<i32: 1>} : vector<8x24xi32>
    %cst_12 = arith.constant dense<0x7F800000> : vector<8xf32>
    %24 = vector.multi_reduction <minimumf>, %20, %cst_12 [1] : vector<8x24xf32> to vector<8xf32>
    %25 = vector.shape_cast %24 : vector<8xf32> to vector<8x1xf32>
    %26 = vector.broadcast %25 : vector<8x1xf32> to vector<8x24xf32>
    %27 = arith.cmpf oeq, %20, %26 : vector<8x24xf32>
    %c24_i32 = arith.constant 24 : i32
    %28 = vector.broadcast %c24_i32 : i32 to vector<8x24xi32>
    %29 = arith.select %27, %23, %28 : vector<8x24xi1>, vector<8x24xi32>
    %cst_13 = arith.constant dense<2147483647> : vector<8xi32>
    %30 = vector.multi_reduction <minsi>, %29, %cst_13 [1] : vector<8x24xi32> to vector<8xi32>
    %31 = vector.shape_cast %30 : vector<8xi32> to vector<8x1xi32>
    %32 = vector.broadcast %31 : vector<8x1xi32> to vector<8x24xi32>
    %33 = arith.cmpi eq, %23, %32 : vector<8x24xi32>
    %c0_i32_14 = arith.constant 0 : i32
    %34 = vector.broadcast %c0_i32_14 : i32 to vector<8x24xi32>
    %35 = arith.select %33, %22, %34 : vector<8x24xi1>, vector<8x24xi32>
    %cst_15 = arith.constant dense<0> : vector<8xi32>
    %36 = vector.multi_reduction <add>, %35, %cst_15 [1] : vector<8x24xi32> to vector<8xi32>
    %37 = vector.shape_cast %36 : vector<8xi32> to vector<8x1xi32>
    %c0_16 = arith.constant 0 : index
    %c0_17 = arith.constant 0 : index
    %38 = vector.load %arg6[%c0_16, %c0_17] : memref<8x8xf32, #tpu.memory_space<vmem>>, vector<8x1xf32>
    tpu.vector_store %arg6[%c0_16, %c0_17], %25 {strides = array<i32>} : memref<8x8xf32, #tpu.memory_space<vmem>>, vector<8x1xf32>,
    %c0_18 = arith.constant 0 : index
    %c0_19 = arith.constant 0 : index
    %39 = vector.load %arg7[%c0_18, %c0_19] : memref<8x8xi32, #tpu.memory_space<vmem>>, vector<8x1xi32>
    tpu.vector_store %arg7[%c0_18, %c0_19], %37 {strides = array<i32>} : memref<8x8xi32, #tpu.memory_space<vmem>>, vector<8x1xi32>,
    %cst_20 = arith.constant 0x7F800000 : f32
    %40 = vector.broadcast %cst_20 : f32 to vector<8x24xf32>
    %41 = arith.select %33, %40, %20 : vector<8x24xi1>, vector<8x24xf32>
    %cst_21 = arith.constant dense<0x7F800000> : vector<8xf32>
    %42 = vector.multi_reduction <minimumf>, %41, %cst_21 [1] : vector<8x24xf32> to vector<8xf32>
    %43 = vector.shape_cast %42 : vector<8xf32> to vector<8x1xf32>
    %44 = vector.broadcast %43 : vector<8x1xf32> to vector<8x24xf32>
    %45 = arith.cmpf oeq, %41, %44 : vector<8x24xf32>
    %c24_i32_22 = arith.constant 24 : i32
    %46 = vector.broadcast %c24_i32_22 : i32 to vector<8x24xi32>
    %47 = arith.select %45, %23, %46 : vector<8x24xi1>, vector<8x24xi32>
    %cst_23 = arith.constant dense<2147483647> : vector<8xi32>
    %48 = vector.multi_reduction <minsi>, %47, %cst_23 [1] : vector<8x24xi32> to vector<8xi32>
    %49 = vector.shape_cast %48 : vector<8xi32> to vector<8x1xi32>
    %50 = vector.broadcast %49 : vector<8x1xi32> to vector<8x24xi32>
    %51 = arith.cmpi eq, %23, %50 : vector<8x24xi32>
    %c0_i32_24 = arith.constant 0 : i32
    %52 = vector.broadcast %c0_i32_24 : i32 to vector<8x24xi32>
    %53 = arith.select %51, %22, %52 : vector<8x24xi1>, vector<8x24xi32>
    %cst_25 = arith.constant dense<0> : vector<8xi32>
    %54 = vector.multi_reduction <add>, %53, %cst_25 [1] : vector<8x24xi32> to vector<8xi32>
    %55 = vector.shape_cast %54 : vector<8xi32> to vector<8x1xi32>
    %c0_26 = arith.constant 0 : index
    %c1 = arith.constant 1 : index
    %56 = vector.load %arg6[%c0_26, %c1] : memref<8x8xf32, #tpu.memory_space<vmem>>, vector<8x1xf32>
    tpu.vector_store %arg6[%c0_26, %c1], %43 {strides = array<i32>} : memref<8x8xf32, #tpu.memory_space<vmem>>, vector<8x1xf32>,
    %c0_27 = arith.constant 0 : index
    %c1_28 = arith.constant 1 : index
    %57 = vector.load %arg7[%c0_27, %c1_28] : memref<8x8xi32, #tpu.memory_space<vmem>>, vector<8x1xi32>
    tpu.vector_store %arg7[%c0_27, %c1_28], %55 {strides = array<i32>} : memref<8x8xi32, #tpu.memory_space<vmem>>, vector<8x1xi32>,
    %cst_29 = arith.constant 0x7F800000 : f32
    %58 = vector.broadcast %cst_29 : f32 to vector<8x24xf32>
    %59 = arith.select %51, %58, %41 : vector<8x24xi1>, vector<8x24xf32>
    %cst_30 = arith.constant dense<0x7F800000> : vector<8xf32>
    %60 = vector.multi_reduction <minimumf>, %59, %cst_30 [1] : vector<8x24xf32> to vector<8xf32>
    %61 = vector.shape_cast %60 : vector<8xf32> to vector<8x1xf32>
    %62 = vector.broadcast %61 : vector<8x1xf32> to vector<8x24xf32>
    %63 = arith.cmpf oeq, %59, %62 : vector<8x24xf32>
    %c24_i32_31 = arith.constant 24 : i32
    %64 = vector.broadcast %c24_i32_31 : i32 to vector<8x24xi32>
    %65 = arith.select %63, %23, %64 : vector<8x24xi1>, vector<8x24xi32>
    %cst_32 = arith.constant dense<2147483647> : vector<8xi32>
    %66 = vector.multi_reduction <minsi>, %65, %cst_32 [1] : vector<8x24xi32> to vector<8xi32>
    %67 = vector.shape_cast %66 : vector<8xi32> to vector<8x1xi32>
    %68 = vector.broadcast %67 : vector<8x1xi32> to vector<8x24xi32>
    %69 = arith.cmpi eq, %23, %68 : vector<8x24xi32>
    %c0_i32_33 = arith.constant 0 : i32
    %70 = vector.broadcast %c0_i32_33 : i32 to vector<8x24xi32>
    %71 = arith.select %69, %22, %70 : vector<8x24xi1>, vector<8x24xi32>
    %cst_34 = arith.constant dense<0> : vector<8xi32>
    %72 = vector.multi_reduction <add>, %71, %cst_34 [1] : vector<8x24xi32> to vector<8xi32>
    %73 = vector.shape_cast %72 : vector<8xi32> to vector<8x1xi32>
    %c0_35 = arith.constant 0 : index
    %c2 = arith.constant 2 : index
    %74 = vector.load %arg6[%c0_35, %c2] : memref<8x8xf32, #tpu.memory_space<vmem>>, vector<8x1xf32>
    tpu.vector_store %arg6[%c0_35, %c2], %61 {strides = array<i32>} : memref<8x8xf32, #tpu.memory_space<vmem>>, vector<8x1xf32>,
    %c0_36 = arith.constant 0 : index
    %c2_37 = arith.constant 2 : index
    %75 = vector.load %arg7[%c0_36, %c2_37] : memref<8x8xi32, #tpu.memory_space<vmem>>, vector<8x1xi32>
    tpu.vector_store %arg7[%c0_36, %c2_37], %73 {strides = array<i32>} : memref<8x8xi32, #tpu.memory_space<vmem>>, vector<8x1xi32>,
    %cst_38 = arith.constant 0x7F800000 : f32
    %76 = vector.broadcast %cst_38 : f32 to vector<8x24xf32>
    %77 = arith.select %69, %76, %59 : vector<8x24xi1>, vector<8x24xf32>
    %cst_39 = arith.constant dense<0x7F800000> : vector<8xf32>
    %78 = vector.multi_reduction <minimumf>, %77, %cst_39 [1] : vector<8x24xf32> to vector<8xf32>
    %79 = vector.shape_cast %78 : vector<8xf32> to vector<8x1xf32>
    %80 = vector.broadcast %79 : vector<8x1xf32> to vector<8x24xf32>
    %81 = arith.cmpf oeq, %77, %80 : vector<8x24xf32>
    %c24_i32_40 = arith.constant 24 : i32
    %82 = vector.broadcast %c24_i32_40 : i32 to vector<8x24xi32>
    %83 = arith.select %81, %23, %82 : vector<8x24xi1>, vector<8x24xi32>
    %cst_41 = arith.constant dense<2147483647> : vector<8xi32>
    %84 = vector.multi_reduction <minsi>, %83, %cst_41 [1] : vector<8x24xi32> to vector<8xi32>
    %85 = vector.shape_cast %84 : vector<8xi32> to vector<8x1xi32>
    %86 = vector.broadcast %85 : vector<8x1xi32> to vector<8x24xi32>
    %87 = arith.cmpi eq, %23, %86 : vector<8x24xi32>
    %c0_i32_42 = arith.constant 0 : i32
    %88 = vector.broadcast %c0_i32_42 : i32 to vector<8x24xi32>
    %89 = arith.select %87, %22, %88 : vector<8x24xi1>, vector<8x24xi32>
    %cst_43 = arith.constant dense<0> : vector<8xi32>
    %90 = vector.multi_reduction <add>, %89, %cst_43 [1] : vector<8x24xi32> to vector<8xi32>
    %91 = vector.shape_cast %90 : vector<8xi32> to vector<8x1xi32>
    %c0_44 = arith.constant 0 : index
    %c3 = arith.constant 3 : index
    %92 = vector.load %arg6[%c0_44, %c3] : memref<8x8xf32, #tpu.memory_space<vmem>>, vector<8x1xf32>
    tpu.vector_store %arg6[%c0_44, %c3], %79 {strides = array<i32>} : memref<8x8xf32, #tpu.memory_space<vmem>>, vector<8x1xf32>,
    %c0_45 = arith.constant 0 : index
    %c3_46 = arith.constant 3 : index
    %93 = vector.load %arg7[%c0_45, %c3_46] : memref<8x8xi32, #tpu.memory_space<vmem>>, vector<8x1xi32>
    tpu.vector_store %arg7[%c0_45, %c3_46], %91 {strides = array<i32>} : memref<8x8xi32, #tpu.memory_space<vmem>>, vector<8x1xi32>,
    %cst_47 = arith.constant 0x7F800000 : f32
    %94 = vector.broadcast %cst_47 : f32 to vector<8x24xf32>
    %95 = arith.select %87, %94, %77 : vector<8x24xi1>, vector<8x24xf32>
    %cst_48 = arith.constant dense<0x7F800000> : vector<8xf32>
    %96 = vector.multi_reduction <minimumf>, %95, %cst_48 [1] : vector<8x24xf32> to vector<8xf32>
    %97 = vector.shape_cast %96 : vector<8xf32> to vector<8x1xf32>
    %98 = vector.broadcast %97 : vector<8x1xf32> to vector<8x24xf32>
    %99 = arith.cmpf oeq, %95, %98 : vector<8x24xf32>
    %c24_i32_49 = arith.constant 24 : i32
    %100 = vector.broadcast %c24_i32_49 : i32 to vector<8x24xi32>
    %101 = arith.select %99, %23, %100 : vector<8x24xi1>, vector<8x24xi32>
    %cst_50 = arith.constant dense<2147483647> : vector<8xi32>
    %102 = vector.multi_reduction <minsi>, %101, %cst_50 [1] : vector<8x24xi32> to vector<8xi32>
    %103 = vector.shape_cast %102 : vector<8xi32> to vector<8x1xi32>
    %104 = vector.broadcast %103 : vector<8x1xi32> to vector<8x24xi32>
    %105 = arith.cmpi eq, %23, %104 : vector<8x24xi32>
    %c0_i32_51 = arith.constant 0 : i32
    %106 = vector.broadcast %c0_i32_51 : i32 to vector<8x24xi32>
    %107 = arith.select %105, %22, %106 : vector<8x24xi1>, vector<8x24xi32>
    %cst_52 = arith.constant dense<0> : vector<8xi32>
    %108 = vector.multi_reduction <add>, %107, %cst_52 [1] : vector<8x24xi32> to vector<8xi32>
    %109 = vector.shape_cast %108 : vector<8xi32> to vector<8x1xi32>
    %c0_53 = arith.constant 0 : index
    %c4 = arith.constant 4 : index
    %110 = vector.load %arg6[%c0_53, %c4] : memref<8x8xf32, #tpu.memory_space<vmem>>, vector<8x1xf32>
    tpu.vector_store %arg6[%c0_53, %c4], %97 {strides = array<i32>} : memref<8x8xf32, #tpu.memory_space<vmem>>, vector<8x1xf32>,
    %c0_54 = arith.constant 0 : index
    %c4_55 = arith.constant 4 : index
    %111 = vector.load %arg7[%c0_54, %c4_55] : memref<8x8xi32, #tpu.memory_space<vmem>>, vector<8x1xi32>
    tpu.vector_store %arg7[%c0_54, %c4_55], %109 {strides = array<i32>} : memref<8x8xi32, #tpu.memory_space<vmem>>, vector<8x1xi32>,
    %cst_56 = arith.constant 0x7F800000 : f32
    %112 = vector.broadcast %cst_56 : f32 to vector<8x24xf32>
    %113 = arith.select %105, %112, %95 : vector<8x24xi1>, vector<8x24xf32>
    %cst_57 = arith.constant dense<0x7F800000> : vector<8xf32>
    %114 = vector.multi_reduction <minimumf>, %113, %cst_57 [1] : vector<8x24xf32> to vector<8xf32>
    %115 = vector.shape_cast %114 : vector<8xf32> to vector<8x1xf32>
    %116 = vector.broadcast %115 : vector<8x1xf32> to vector<8x24xf32>
    %117 = arith.cmpf oeq, %113, %116 : vector<8x24xf32>
    %c24_i32_58 = arith.constant 24 : i32
    %118 = vector.broadcast %c24_i32_58 : i32 to vector<8x24xi32>
    %119 = arith.select %117, %23, %118 : vector<8x24xi1>, vector<8x24xi32>
    %cst_59 = arith.constant dense<2147483647> : vector<8xi32>
    %120 = vector.multi_reduction <minsi>, %119, %cst_59 [1] : vector<8x24xi32> to vector<8xi32>
    %121 = vector.shape_cast %120 : vector<8xi32> to vector<8x1xi32>
    %122 = vector.broadcast %121 : vector<8x1xi32> to vector<8x24xi32>
    %123 = arith.cmpi eq, %23, %122 : vector<8x24xi32>
    %c0_i32_60 = arith.constant 0 : i32
    %124 = vector.broadcast %c0_i32_60 : i32 to vector<8x24xi32>
    %125 = arith.select %123, %22, %124 : vector<8x24xi1>, vector<8x24xi32>
    %cst_61 = arith.constant dense<0> : vector<8xi32>
    %126 = vector.multi_reduction <add>, %125, %cst_61 [1] : vector<8x24xi32> to vector<8xi32>
    %127 = vector.shape_cast %126 : vector<8xi32> to vector<8x1xi32>
    %c0_62 = arith.constant 0 : index
    %c5 = arith.constant 5 : index
    %128 = vector.load %arg6[%c0_62, %c5] : memref<8x8xf32, #tpu.memory_space<vmem>>, vector<8x1xf32>
    tpu.vector_store %arg6[%c0_62, %c5], %115 {strides = array<i32>} : memref<8x8xf32, #tpu.memory_space<vmem>>, vector<8x1xf32>,
    %c0_63 = arith.constant 0 : index
    %c5_64 = arith.constant 5 : index
    %129 = vector.load %arg7[%c0_63, %c5_64] : memref<8x8xi32, #tpu.memory_space<vmem>>, vector<8x1xi32>
    tpu.vector_store %arg7[%c0_63, %c5_64], %127 {strides = array<i32>} : memref<8x8xi32, #tpu.memory_space<vmem>>, vector<8x1xi32>,
    %cst_65 = arith.constant 0x7F800000 : f32
    %130 = vector.broadcast %cst_65 : f32 to vector<8x24xf32>
    %131 = arith.select %123, %130, %113 : vector<8x24xi1>, vector<8x24xf32>
    %cst_66 = arith.constant dense<0x7F800000> : vector<8xf32>
    %132 = vector.multi_reduction <minimumf>, %131, %cst_66 [1] : vector<8x24xf32> to vector<8xf32>
    %133 = vector.shape_cast %132 : vector<8xf32> to vector<8x1xf32>
    %134 = vector.broadcast %133 : vector<8x1xf32> to vector<8x24xf32>
    %135 = arith.cmpf oeq, %131, %134 : vector<8x24xf32>
    %c24_i32_67 = arith.constant 24 : i32
    %136 = vector.broadcast %c24_i32_67 : i32 to vector<8x24xi32>
    %137 = arith.select %135, %23, %136 : vector<8x24xi1>, vector<8x24xi32>
    %cst_68 = arith.constant dense<2147483647> : vector<8xi32>
    %138 = vector.multi_reduction <minsi>, %137, %cst_68 [1] : vector<8x24xi32> to vector<8xi32>
    %139 = vector.shape_cast %138 : vector<8xi32> to vector<8x1xi32>
    %140 = vector.broadcast %139 : vector<8x1xi32> to vector<8x24xi32>
    %141 = arith.cmpi eq, %23, %140 : vector<8x24xi32>
    %c0_i32_69 = arith.constant 0 : i32
    %142 = vector.broadcast %c0_i32_69 : i32 to vector<8x24xi32>
    %143 = arith.select %141, %22, %142 : vector<8x24xi1>, vector<8x24xi32>
    %cst_70 = arith.constant dense<0> : vector<8xi32>
    %144 = vector.multi_reduction <add>, %143, %cst_70 [1] : vector<8x24xi32> to vector<8xi32>
    %145 = vector.shape_cast %144 : vector<8xi32> to vector<8x1xi32>
    %c0_71 = arith.constant 0 : index
    %c6 = arith.constant 6 : index
    %146 = vector.load %arg6[%c0_71, %c6] : memref<8x8xf32, #tpu.memory_space<vmem>>, vector<8x1xf32>
    tpu.vector_store %arg6[%c0_71, %c6], %133 {strides = array<i32>} : memref<8x8xf32, #tpu.memory_space<vmem>>, vector<8x1xf32>,
    %c0_72 = arith.constant 0 : index
    %c6_73 = arith.constant 6 : index
    %147 = vector.load %arg7[%c0_72, %c6_73] : memref<8x8xi32, #tpu.memory_space<vmem>>, vector<8x1xi32>
    tpu.vector_store %arg7[%c0_72, %c6_73], %145 {strides = array<i32>} : memref<8x8xi32, #tpu.memory_space<vmem>>, vector<8x1xi32>,
    %cst_74 = arith.constant 0x7F800000 : f32
    %148 = vector.broadcast %cst_74 : f32 to vector<8x24xf32>
    %149 = arith.select %141, %148, %131 : vector<8x24xi1>, vector<8x24xf32>
    %cst_75 = arith.constant dense<0x7F800000> : vector<8xf32>
    %150 = vector.multi_reduction <minimumf>, %149, %cst_75 [1] : vector<8x24xf32> to vector<8xf32>
    %151 = vector.shape_cast %150 : vector<8xf32> to vector<8x1xf32>
    %152 = vector.broadcast %151 : vector<8x1xf32> to vector<8x24xf32>
    %153 = arith.cmpf oeq, %149, %152 : vector<8x24xf32>
    %c24_i32_76 = arith.constant 24 : i32
    %154 = vector.broadcast %c24_i32_76 : i32 to vector<8x24xi32>
    %155 = arith.select %153, %23, %154 : vector<8x24xi1>, vector<8x24xi32>
    %cst_77 = arith.constant dense<2147483647> : vector<8xi32>
    %156 = vector.multi_reduction <minsi>, %155, %cst_77 [1] : vector<8x24xi32> to vector<8xi32>
    %157 = vector.shape_cast %156 : vector<8xi32> to vector<8x1xi32>
    %158 = vector.broadcast %157 : vector<8x1xi32> to vector<8x24xi32>
    %159 = arith.cmpi eq, %23, %158 : vector<8x24xi32>
    %c0_i32_78 = arith.constant 0 : i32
    %160 = vector.broadcast %c0_i32_78 : i32 to vector<8x24xi32>
    %161 = arith.select %159, %22, %160 : vector<8x24xi1>, vector<8x24xi32>
    %cst_79 = arith.constant dense<0> : vector<8xi32>
    %162 = vector.multi_reduction <add>, %161, %cst_79 [1] : vector<8x24xi32> to vector<8xi32>
    %163 = vector.shape_cast %162 : vector<8xi32> to vector<8x1xi32>
    %c0_80 = arith.constant 0 : index
    %c7 = arith.constant 7 : index
    %164 = vector.load %arg6[%c0_80, %c7] : memref<8x8xf32, #tpu.memory_space<vmem>>, vector<8x1xf32>
    tpu.vector_store %arg6[%c0_80, %c7], %151 {strides = array<i32>} : memref<8x8xf32, #tpu.memory_space<vmem>>, vector<8x1xf32>,
    %c0_81 = arith.constant 0 : index
    %c7_82 = arith.constant 7 : index
    %165 = vector.load %arg7[%c0_81, %c7_82] : memref<8x8xi32, #tpu.memory_space<vmem>>, vector<8x1xi32>
    tpu.vector_store %arg7[%c0_81, %c7_82], %163 {strides = array<i32>} : memref<8x8xi32, #tpu.memory_space<vmem>>, vector<8x1xi32>,
    %c0_i32_83 = arith.constant 0 : i32
    %166 = arith.cmpi eq, %arg2, %c0_i32_83 : i32
    %167 = arith.extui %166 : i1 to i32
    %c0_i32_84 = arith.constant 0 : i32
    %168 = arith.cmpi ne, %167, %c0_i32_84 : i32
    scf.if %168 {
      %c0_85 = arith.constant 0 : index
      %c0_86 = arith.constant 0 : index
      %169 = vector.load %arg7[%c0_85, %c0_86] : memref<8x8xi32, #tpu.memory_space<vmem>>, vector<8x8xi32>
      %c0_87 = arith.constant 0 : index
      %c0_88 = arith.constant 0 : index
      %c0_89 = arith.constant 0 : index
      %170 = vector.load %arg5[%c0_87, %c0_88, %c0_89] : memref<1x8x8xi32, #tpu.memory_space<vmem>>, vector<1x8x8xi32>
      %171 = vector.shape_cast %170 : vector<1x8x8xi32> to vector<8x8xi32>
      %172 = vector.shape_cast %169 : vector<8x8xi32> to vector<1x8x8xi32>
      tpu.vector_store %arg5[%c0_87, %c0_88, %c0_89], %172 {strides = array<i32>} : memref<1x8x8xi32, #tpu.memory_space<vmem>>, vector<1x8x8xi32>,
    } else {
    }
    return
  }
  func.func @transform_0(%arg0: i32, %arg1: i32, %arg2: i32) -> (i32, i32, i32) {
    %c0_i32 = arith.constant 0 : i32
    %c0_i32_0 = arith.constant 0 : i32
    return %arg0, %arg1, %c0_i32 : i32, i32, i32
  }
  func.func @transform_1(%arg0: i32, %arg1: i32, %arg2: i32) -> (i32, i32, i32) {
    %c0_i32 = arith.constant 0 : i32
    %c0_i32_0 = arith.constant 0 : i32
    return %arg0, %arg2, %c0_i32 : i32, i32, i32
  }
  func.func @transform_2(%arg0: i32, %arg1: i32, %arg2: i32) -> (i32, i32, i32) {
    %c0_i32 = arith.constant 0 : i32
    %c0_i32_0 = arith.constant 0 : i32
    return %arg0, %arg1, %c0_i32 : i32, i32, i32
  }
}

</mosaic_0001>

<bundles_post_ra>
// kernel: tpu_custom_call.1
= control target key start
LH: loop header
LB: loop body
LE: loop exit
PB: predicated region body
PF: predicated region fallthrough
CT: control target
= control target key end

     0   :  { %7 = vsyncpa [#allocation5], 0  ;;  %s1489_s0 = inlined_call_operand.vmem [shape: f32[2,8,3], index: 0, kind: input, shape index: {}]   ;;  %s1490_s1 = inlined_call_operand.vmem [shape: f32[2,16,3], index: 1, kind: input, shape index: {}]   ;;  %s1491_s2 = inlined_call_operand.hbm [shape: s32[2,8,8], index: 2, kind: output, shape index: {}]  }
   0x1   :  { %9 = vsyncpa [#allocation5 + $0x1], 0  ;;  %s1213_s9 = smov 0   ;;  %s1215_s10 = smov 0  }
   0x2   :  { %s1217_s11 = smov 0   ;;  %s1219_s12 = smov 0  }
   0x3   :  { %s1221_s13 = smov 0   ;;  %s1223_s14 = smov 0  }
   0x4 LB: > { %s1017_s15 = sadd.s32 4294967295, %s1189_s14   ;;  %s1018_s16 = sadd.s32 4294967294, %s1189_s14   ;;  %s1189_s14 = sphi %s1223_s14, %s15_s14   ;;  %s1185_s13 = sphi %s1221_s13, %s1504_s13   ;;  %s1181_s12 = sphi %s1219_s12, %s1503_s12   ;;  %s1177_s11 = sphi %s1217_s11, %s1502_s11   ;;  %s1173_s10 = sphi %s1215_s10, %s1501_s10   ;;  %s1169_s9 = sphi %s1213_s9, %s1500_s9  }
   0x5   : > { %s34_s17 = sadd.s32 1, %s1185_s13  ;;  %s99_s18 = sadd.s32 1, %s1177_s11 }
   0x6   : > { %p36_p0 = scmp.ge.s32.totalorder %s34_s17, 2  ;;  %p109_p1 = scmp.ne.s32.totalorder %s1177_s11, %s1173_s10 }
   0x7   : > { %p110_p2 = scmp.eq.s32.totalorder %s1017_s15, 1  ;;  %p115_p3 = scmp.ne.s32.totalorder %s1173_s10, %s1169_s9 }
   0x8   : > { %s1506_s17 = smov (%p36_p0, %s34_s17), 0  ;;  %p116_p5 = scmp.eq.s32.totalorder %s1018_s16, 1 }
   0x9   : > { %p1253_p4 = por %p110_p2, %p109_p1  ;;  %s94_s20 = ssub.s32 %s1185_s13, %s1506_s17 }
   0xa   : > { %p1021_p6 = scmp.ge.s32.totalorder %s1189_s14, 1  ;;  %p97_p7 = scmp.eq.s32.totalorder %s94_s20, 0 }
   0xb   : > { %p1260_p8 = por %p116_p5, %p115_p3  ;;  %p157_p9 = scmp.lt.s32.totalorder %s1189_s14, 3 }
   0xc   : > { %s1266_s22 = scalar_select %p97_p7, %s1177_s11, %s99_s18  }
   0xd   : > { %p158_p10 = pnand %p1021_p6, %p157_p9 }
   0xe   : > { %p190_p11 = scmp.lt.s32.totalorder (!%p158_p10), %s1181_s12, 1  ;;  %v1191_v0 = vmov (!%p158_p10), 0.0|0.0   ;;  %vm1192_vm0 = vmmov (!%p158_p10), 0   ;;  %v1193_v1 = vmov (!%p158_p10), 0.0   ;;  %vm217_vm1 = vcmask (!%p158_p10), 23552   ;;  %s1196_s4 = smov (!%p158_p10), 8  }
   0xf   : > { %161 = sbr.rel (%p158_p10) target bundleno = 4256 (0x10a0), region = 28  ;;  %1044 = vmatprep.subr.bf16.mxu0 (!%p158_p10), %v1191_v0  ;;  %1041 = vmatprep.mubr.msk.f32.mxu0 (!%p158_p10), %vm1192_vm0, %v1193_v1  ;;  %vm1046_vm2 = vmpackc.low (!%p158_p10), %vm217_vm1, %vm217_vm1  ;;  %v307_v10 = vlaneseq (!%p158_p10)  ;;  %vm211_vm3 = vcmask (!%p158_p10), 64512   ;;  %v1194_v11 = vmov (!%p158_p10), 0   ;;  %v1195_v12 = vmov (!%p158_p10), inf   ;;  %s187_s5 = sand.u32 (!%p158_p10), 1, %s1173_s10  }
  0x10   : > { %1109 = vset.pattern.permute.xlu1 (!%p158_p10), %v1194_v11  ;;  %212 = vst.msk [vmem:[#allocation2] sm:$0xff] (!%p158_p10), %vm211_vm3, %v1195_v12  ;;  %213 = vst.msk [vmem:[#allocation3] sm:$0xff] (!%p158_p10), %vm211_vm3, %v1194_v11  ;;  %1110 = vset.pattern.permute.xlu0 (!%p158_p10), %v1194_v11  ;;  %vm507_vm4 = vcmask (!%p158_p10), 195712   ;;  %vm572_vm5 = vcmask (!%p158_p10), 1041409   ;;  %vm574_vm6 = vcmask (!%p158_p10), 1042434   ;;  %vm576_vm7 = vcmask (!%p158_p10), 1043459  }
  0x11   : > { %v1284_v13 = vshrl.u32 (!%p158_p10), %v307_v10, 7  ;;  %vm578_vm8 = vcmask (!%p158_p10), 1044484   ;;  %vm580_vm9 = vcmask (!%p158_p10), 1045509   ;;  %vm582_vm10 = vcmask (!%p158_p10), 1046534   ;;  %s1022_s6 = sshll.u32 (!%p158_p10), %s187_s5, 3  ;;  %s1030_s7 = sshll.u32 (!%p158_p10), %s1181_s12, 7 }
  0x12   : > { %vm584_vm11 = vcmask (!%p158_p10), 1047559   ;;  %vm593_vm12 = vcmask (!%p158_p10), 195584   ;;  %vm629_vm13 = vcmask (!%p158_p10), 7168   ;;  %s189_s8 = scalar_lea.vmem (!%p158_p10), [#allocation4], %s1022_s6  ;;  %s1441_s20 = scalar_lea.hbm (!%p158_p10), %s1491_s2, %s1030_s7 }
  0x13   : > { %v320_v14 = vsub.s32 (!%p158_p10), 1, %v1284_v13  ;;  %v309_v15 = vsub.s32 (!%p158_p10), 0, %v1284_v13  ;;  %v353_v21 = vsub.s32 (!%p158_p10), 4, %v1284_v13  ;;  %v364_v23 = vsub.s32 (!%p158_p10), 5, %v1284_v13  ;;  %s925_s15 = sshll.u32 (!%p158_p10), %s189_s8, 4  ;;  %s1443_s15 = int_to_ptr.vmem [resolvable:$true] %s925_s15 }
  0x14   : > { %v375_v25 = vsub.s32 (!%p158_p10), 6, %v1284_v13  ;;  %v331_v26 = vsub.s32 (!%p158_p10), 2, %v1284_v13  ;;  %v386_v29 = vsub.s32 (!%p158_p10), 7, %v1284_v13  ;;  %v342_v31 = vsub.s32 (!%p158_p10), 3, %v1284_v13 }
  0x16   : > { %s191_s23 = scalar_select %p190_p11, %s1181_s12, 1 }
  0x17   : > { %s1197_s12 = smov [#allocation4]  }
  0x18   : > { %s1033_s24 = sshll.u32 %s191_s23, 4  ;;  %s1023_s28 = sshll.u32 %s191_s23, 3 }
  0x19   : > { %s205_s27 = scalar_lea.vmem %s1490_s1, %s1033_s24  ;;  %s196_s3 = scalar_lea.vmem %s1489_s0, %s1023_s28 }
  0x1a   : > { %v215_v2 = vld [vmem:[%s205_s27] sm:$0xff]  ;;  %v216_v3 = vld [vmem:[%s205_s27 + $0x8] sm:$0xff]  ;;  %s911_s23 = scalar_lea.sflag [#allocation5], %s187_s5  ;;  %s1111_s24 = scalar_lea.vmem %s1443_s15, 128 }
  0x1b   : > { %v1045_v4 = vpack.c.bf16 %v216_v3, %v215_v2  ;;  %v297_v5 = vmul.f32 %v215_v2, %v215_v2  ;;  %v298_v6 = vmul.f32 %v216_v3, %v216_v3  ;;  %v214_v9 = vld [vmem:[%s196_s3] sm:$0xff]  ;;  %p1112_p12 = scmp.ne.s32.totalorder %s1443_s15, %s1111_s24  ;;  %s1115_s25 = sshll.u32 %s1197_s12, 4  ;;  %s1116_s25 = int_to_ptr.vmem [resolvable:$false] %s1115_s25 }
  0x1c   : > { %s1117_s26 = scalar_lea.vmem %s1116_s25, 256  ;;  %p1118_p1 = scmp.lt.s32.totalorder %s1443_s15, %s1116_s25 }
  0x1d   : > { %1047 = vmatpush3.bf16.xpose.msk.msra.mxu0 %vm1046_vm2, %v1045_v4  ;;  %v299_v7 = vsel %vm217_vm1, %v297_v5, 0.0  ;;  %v302_v8 = vsel %vm217_vm1, %v298_v6, 0.0  ;;  %p1113_p13 = pnand %p1112_p12, %p1253_p4  ;;  %p1119_p2 = scmp.lt.s32.totalorder %s1117_s26, %s1111_s24 }
  0x1e   : > { %300 = vadd.xlane.f32.xlu0 %v299_v7 }
  0x1f   : > { %p1114_p0 = pneg %p1113_p13  ;;  %p1120_p3 = por %p1119_p2, %p1118_p1 }
  0x21   : > { %p1121_p5 = pnand %p1120_p3, %p1114_p0 }
  0x22   : > { %303 = vadd.xlane.f32.xlu0 %v302_v8 }
  0x24   : > { %1042 = vmatmul.mubr.msk.f32.vlgmr.msra.gmra.mrb[0].mxu0 %vm217_vm1, %v214_v9  ;;  %v1295_v9 = vand.u32 127, %v307_v10  ;;  %vm668_vm1 = vcmask 15368  }
  0xab   : > { %v301_v33 = vpop.xlane.xlu0 %300 }
  0xaf   : > { %v304_v34 = vpop.xlane.xlu0 %303 }
  0xf7   : > { %v293_v16 = vpop.f32.mrb[0].mxu0 }
  0xf8   : > { %v305_v17 = vmul.f32 2.0, %v293_v16  ;;  %v1043_v18 = vpop.f32.mrb[1].mxu0 }
  0xfa   : > { %v321_v19 = vrot.slane %v305_v17, %v320_v14  ;;  %v310_v20 = vrot.slane %v305_v17, %v309_v15  ;;  %v354_v22 = vrot.slane %v305_v17, %v353_v21  ;;  %v365_v24 = vrot.slane %v305_v17, %v364_v23 }
  0xfb   : > { %v376_v27 = vrot.slane %v305_v17, %v375_v25  ;;  %v332_v28 = vrot.slane %v305_v17, %v331_v26  ;;  %v387_v30 = vrot.slane %v305_v17, %v386_v29  ;;  %v343_v32 = vrot.slane %v305_v17, %v342_v31 }
  0xfc   : > { %323 = vbcast.lane.b32.xlu0 %v321_v19, 256  ;;  %312 = vbcast.lane.b32.xlu1 %v310_v20, 256  ;;  %v502_v14 = vadd.s32 4294967280, %v1295_v9  ;;  %v497_v15 = vadd.s32 4294967288, %v1295_v9 }
  0xfe   : > { %v505_v18 = vsub.s32 %v502_v14, %v1284_v13 }
 0x100   : > { %360 = vbcast.lane.b32.xlu0 %v354_v22, 264  ;;  %316 = vbcast.lane.b32.xlu1 %v310_v20, 264 }
 0x104   : > { %371 = vbcast.lane.b32.xlu0 %v365_v24, 264  ;;  %327 = vbcast.lane.b32.xlu1 %v321_v19, 264  ;;  %v500_v19 = vsub.s32 %v497_v15, %v1284_v13 }
 0x108   : > { %382 = vbcast.lane.b32.xlu0 %v376_v27, 264  ;;  %334 = vbcast.lane.b32.xlu1 %v332_v28, 256 }
 0x10c   : > { %393 = vbcast.lane.b32.xlu0 %v387_v30, 264  ;;  %338 = vbcast.lane.b32.xlu1 %v332_v28, 264 }
 0x110   : > { %345 = vbcast.lane.b32.xlu1 %v343_v32, 256 }
 0x114   : > { %349 = vbcast.lane.b32.xlu1 %v343_v32, 264 }
 0x118   : > { %356 = vbcast.lane.b32.xlu1 %v354_v22, 256 }
 0x11c   : > { %367 = vbcast.lane.b32.xlu1 %v365_v24, 256 }
 0x120   : > { %378 = vbcast.lane.b32.xlu1 %v376_v27, 256 }
 0x124   : > { %389 = vbcast.lane.b32.xlu1 %v387_v30, 256 }
 0x16e   : > { %v313_v35 = vpop.permute.xlu1 %312  ;;  %v324_v37 = vpop.permute.xlu0 %323 }
 0x16f   : > { %v411_v36 = vsub.f32 %v301_v33, %v313_v35  ;;  %v413_v39 = vsub.f32 %v301_v33, %v324_v37 }
 0x171   : > { %450 = vperm.xlu1 %1109, %v411_v36  }
 0x172   : > { %v317_v38 = vpop.permute.xlu1 %316  ;;  %v361_v47 = vpop.permute.xlu0 %360 }
 0x173   : > { %v412_v40 = vsub.f32 %v304_v34, %v317_v38  ;;  %v420_v54 = vsub.f32 %v304_v34, %v361_v47 }
 0x175   : > { %456 = vperm.xlu1 %1109, %v413_v39   ;;  %453 = vperm.xlu0 %1110, %v412_v40  }
 0x176   : > { %v328_v41 = vpop.permute.xlu1 %327  ;;  %v372_v52 = vpop.permute.xlu0 %371 }
 0x177   : > { %v414_v42 = vsub.f32 %v304_v34, %v328_v41  ;;  %v422_v58 = vsub.f32 %v304_v34, %v372_v52  ;;  %v432_v52 = vld [vmem:[#allocation2] sm:$0xff] }
 0x179   : > { %459 = vperm.xlu1 %1109, %v414_v42  }
 0x17a   : > { %v335_v43 = vpop.permute.xlu1 %334  ;;  %v383_v56 = vpop.permute.xlu0 %382 }
 0x17b   : > { %v415_v44 = vsub.f32 %v301_v33, %v335_v43  ;;  %v424_v61 = vsub.f32 %v304_v34, %v383_v56 }
 0x17d   : > { %462 = vperm.xlu0 %1110, %v415_v44  }
 0x17e   : > { %v339_v45 = vpop.permute.xlu1 %338  ;;  %v394_v63 = vpop.permute.xlu0 %393 }
 0x17f   : > { %v416_v46 = vsub.f32 %v304_v34, %v339_v45  ;;  %v426_v1 = vsub.f32 %v304_v34, %v394_v63 }
 0x181   : > { %465 = vperm.xlu1 %1109, %v416_v46  }
 0x182   : > { %v346_v48 = vpop.permute.xlu1 %345 }
 0x183   : > { %v417_v49 = vsub.f32 %v301_v33, %v346_v48 }
 0x185   : > { %468 = vperm.xlu0 %1110, %v417_v49  }
 0x186   : > { %v350_v50 = vpop.permute.xlu1 %349 }
 0x187   : > { %v418_v51 = vsub.f32 %v304_v34, %v350_v50 }
 0x189   : > { %471 = vperm.xlu1 %1109, %v418_v51  }
 0x18a   : > { %v357_v53 = vpop.permute.xlu1 %356 }
 0x18b   : > { %v419_v55 = vsub.f32 %v301_v33, %v357_v53 }
 0x18d   : > { %477 = vperm.xlu1 %1109, %v420_v54   ;;  %474 = vperm.xlu0 %1110, %v419_v55  }
 0x18e   : > { %v368_v57 = vpop.permute.xlu1 %367 }
 0x18f   : > { %v421_v59 = vsub.f32 %v301_v33, %v368_v57 }
 0x191   : > { %483 = vperm.xlu1 %1109, %v422_v58   ;;  %480 = vperm.xlu0 %1110, %v421_v59  }
 0x192   : > { %v379_v60 = vpop.permute.xlu1 %378 }
 0x193   : > { %v423_v62 = vsub.f32 %v301_v33, %v379_v60 }
 0x195   : > { %489 = vperm.xlu1 %1109, %v424_v61   ;;  %486 = vperm.xlu0 %1110, %v423_v62  }
 0x196   : > { %v390_v0 = vpop.permute.xlu1 %389 }
 0x197   : > { %v425_v2 = vsub.f32 %v301_v33, %v390_v0 }
 0x199   : > { %495 = vperm.xlu1 %1109, %v426_v1   ;;  %492 = vperm.xlu0 %1110, %v425_v2  }
 0x1f0   : > { %v451_v3 = vpop.permute.xlu1 %450 }
 0x1f1   : > { %v501_v26 = vrot.slane %v451_v3, %v500_v19 }
 0x1f4   : > { %v457_v4 = vpop.permute.xlu1 %456  ;;  %v454_v5 = vpop.permute.xlu0 %453 }
 0x1f5   : > { %v506_v24 = vrot.slane %v454_v5, %v505_v18  ;;  %v512_v10 = vrot.slane %v457_v4, %v500_v19 }
 0x1f7   : > { %v508_v36 = vsel %vm507_vm4, %v506_v24, %v501_v26 }
 0x1f8   : > { %v460_v6 = vpop.permute.xlu1 %459 }
 0x1f9   : > { %v516_v20 = vrot.slane %v460_v6, %v505_v18 }
 0x1fb   : > { %v517_v30 = vsel %vm507_vm4, %v516_v20, %v512_v10 }
 0x1fc   : > { %v463_v7 = vpop.permute.xlu0 %462  ;;  %v573_v40 = vsel %vm572_vm5, %v517_v30, %v508_v36 }
 0x1fd   : > { %v521_v27 = vrot.slane %v463_v7, %v500_v19 }
 0x200   : > { %v466_v8 = vpop.permute.xlu1 %465 }
 0x201   : > { %v525_v21 = vrot.slane %v466_v8, %v505_v18 }
 0x203   : > { %v526_v13 = vsel %vm507_vm4, %v525_v21, %v521_v27 }
 0x204   : > { %v469_v11 = vpop.permute.xlu0 %468  ;;  %v575_v42 = vsel %vm574_vm6, %v526_v13, %v573_v40  ;;  %vm707_vm6 = vcmask 23568  }
 0x205   : > { %v530_v31 = vrot.slane %v469_v11, %v500_v19 }
 0x208   : > { %v472_v12 = vpop.permute.xlu1 %471 }
 0x209   : > { %v534_v25 = vrot.slane %v472_v12, %v505_v18 }
 0x20b   : > { %v535_v37 = vsel %vm507_vm4, %v534_v25, %v530_v31 }
 0x20c   : > { %v475_v16 = vpop.permute.xlu0 %474  ;;  %v478_v17 = vpop.permute.xlu1 %477  ;;  %v577_v44 = vsel %vm576_vm7, %v535_v37, %v575_v42 }
 0x20d   : > { %v539_v28 = vrot.slane %v475_v16, %v500_v19  ;;  %v543_v29 = vrot.slane %v478_v17, %v505_v18 }
 0x20f   : > { %v544_v41 = vsel %vm507_vm4, %v543_v29, %v539_v28 }
 0x210   : > { %v481_v22 = vpop.permute.xlu0 %480  ;;  %v484_v23 = vpop.permute.xlu1 %483  ;;  %v579_v48 = vsel %vm578_vm8, %v544_v41, %v577_v44 }
 0x211   : > { %v548_v32 = vrot.slane %v481_v22, %v500_v19  ;;  %v552_v33 = vrot.slane %v484_v23, %v505_v18 }
 0x213   : > { %v553_v43 = vsel %vm507_vm4, %v552_v33, %v548_v32 }
 0x214   : > { %v487_v34 = vpop.permute.xlu0 %486  ;;  %v490_v35 = vpop.permute.xlu1 %489  ;;  %v581_v51 = vsel %vm580_vm9, %v553_v43, %v579_v48 }
 0x215   : > { %v557_v38 = vrot.slane %v487_v34, %v500_v19  ;;  %v561_v39 = vrot.slane %v490_v35, %v505_v18 }
 0x217   : > { %v562_v45 = vsel %vm507_vm4, %v561_v39, %v557_v38 }
 0x218   : > { %v493_v46 = vpop.permute.xlu0 %492  ;;  %v496_v47 = vpop.permute.xlu1 %495  ;;  %v583_v54 = vsel %vm582_vm10, %v562_v45, %v581_v51  ;;  %vm746_vm10 = vcmask 31768  }
 0x219   : > { %v566_v49 = vrot.slane %v493_v46, %v500_v19  ;;  %v570_v50 = vrot.slane %v496_v47, %v505_v18 }
 0x21b   : > { %v571_v53 = vsel %vm507_vm4, %v570_v50, %v566_v49 }
 0x21c   : > { %v585_v55 = vsel %vm584_vm11, %v571_v53, %v583_v54 }
 0x21d   : > { %v588_v56 = vsel %vm211_vm3, %v432_v52, %v585_v55 }
 0x21e   : > { %v594_v57 = vsel %vm593_vm12, %v588_v56, inf }
 0x21f   : > { %595 = vmin.xlane.f32.xlu0 %v594_v57 }
 0x2ac   : > { %v596_v58 = vpop.xlane.xlu0 %595 }
 0x2ad   : > { %vm597_vm14 = vcmp.eq.f32.partialorder %v588_v56, %v596_v58  ;;  %630 = vst.msk [vmem:[#allocation2] sm:$0xff] %vm629_vm13, %v596_v58 }
 0x2ae   : > { %v598_v59 = vsel %vm597_vm14, %v1295_v9, 24 }
 0x2af   : > { %v599_v60 = vsel %vm593_vm12, %v598_v59, 2147483647 }
 0x2b0   : > { %v601_v61 = vshra.s32 %v599_v60, 16  ;;  %v600_v63 = vand.u32 65535, %v599_v60 }
 0x2b2   : > { %v603_v62 = vcvt.s32.f32 %v601_v61  ;;  %v602_v1 = vcvt.s32.f32 %v600_v63 }
 0x2b4   : > { %604 = vmin.xlane.f32.xlu1 %v603_v62 }
 0x341   : > { %v605_v0 = vpop.xlane.xlu1 %604 }
 0x342   : > { %vm606_vm15 = vcmp.eq.f32.partialorder %v603_v62, %v605_v0  ;;  %v611_v3 = vcvt.f32.s32 %v605_v0 }
 0x343   : > { %v607_v2 = vsel %vm606_vm15, %v602_v1, inf }
 0x344   : > { %608 = vmin.xlane.f32.xlu0 %v607_v2  ;;  %v612_v5 = vshll.u32 %v611_v3, 16 }
 0x3d1   : > { %v609_v4 = vpop.xlane.xlu0 %608 }
 0x3d2   : > { %v610_v6 = vcvt.f32.s32 %v609_v4 }
 0x3d4   : > { %v1315_v7 = vadd.s32 %v612_v5, %v610_v6 }
 0x3d6   : > { %vm614_vm0 = vcmp.eq.s32.totalorder %v1295_v9, %v1315_v7 }
 0x3d7   : > { %v632_v8 = vsel %vm614_vm0, inf, %v588_v56 }
 0x3d8   : > { %v633_v11 = vsel %vm593_vm12, %v632_v8, inf }
 0x3d9   : > { %634 = vmin.xlane.f32.xlu0 %v633_v11 }
 0x466   : > { %v635_v12 = vpop.xlane.xlu0 %634 }
 0x467   : > { %vm636_vm2 = vcmp.eq.f32.partialorder %v632_v8, %v635_v12  ;;  %669 = vst.msk [vmem:[#allocation2] sm:$0xff] %vm668_vm1, %v635_v12 }
 0x468   : > { %v637_v14 = vsel %vm636_vm2, %v1295_v9, 24  ;;  %vm1494_vm2 = vcmask 39968  }
 0x469   : > { %v638_v15 = vsel %vm593_vm12, %v637_v14, 2147483647 }
 0x46a   : > { %v640_v16 = vshra.s32 %v638_v15, 16  ;;  %v639_v18 = vand.u32 65535, %v638_v15 }
 0x46c   : > { %v642_v17 = vcvt.s32.f32 %v640_v16  ;;  %v641_v20 = vcvt.s32.f32 %v639_v18 }
 0x46e   : > { %643 = vmin.xlane.f32.xlu1 %v642_v17 }
 0x4fb   : > { %v644_v19 = vpop.xlane.xlu1 %643 }
 0x4fc   : > { %vm645_vm4 = vcmp.eq.f32.partialorder %v642_v17, %v644_v19  ;;  %v650_v22 = vcvt.f32.s32 %v644_v19 }
 0x4fd   : > { %v646_v21 = vsel %vm645_vm4, %v641_v20, inf }
 0x4fe   : > { %647 = vmin.xlane.f32.xlu0 %v646_v21  ;;  %v651_v24 = vshll.u32 %v650_v22, 16 }
 0x58b   : > { %v648_v23 = vpop.xlane.xlu0 %647 }
 0x58c   : > { %v649_v10 = vcvt.f32.s32 %v648_v23 }
 0x58e   : > { %v1326_v25 = vadd.s32 %v651_v24, %v649_v10 }
 0x590   : > { %vm653_vm5 = vcmp.eq.s32.totalorder %v1295_v9, %v1326_v25 }
 0x591   : > { %v671_v26 = vsel %vm653_vm5, inf, %v632_v8 }
 0x592   : > { %v672_v27 = vsel %vm593_vm12, %v671_v26, inf }
 0x593   : > { %673 = vmin.xlane.f32.xlu1 %v672_v27 }
 0x620   : > { %v674_v28 = vpop.xlane.xlu1 %673 }
 0x621   : > { %vm675_vm7 = vcmp.eq.f32.partialorder %v671_v26, %v674_v28  ;;  %708 = vst.msk [vmem:[#allocation2] sm:$0xff] %vm707_vm6, %v674_v28 }
 0x622   : > { %v676_v29 = vsel %vm675_vm7, %v1295_v9, 24 }
 0x623   : > { %v677_v30 = vsel %vm593_vm12, %v676_v29, 2147483647 }
 0x624   : > { %v679_v31 = vshra.s32 %v677_v30, 16  ;;  %v678_v33 = vand.u32 65535, %v677_v30 }
 0x626   : > { %v681_v32 = vcvt.s32.f32 %v679_v31  ;;  %v680_v34 = vcvt.s32.f32 %v678_v33 }
 0x628   : > { %682 = vmin.xlane.f32.xlu0 %v681_v32 }
 0x6b5   : > { %v683_v13 = vpop.xlane.xlu0 %682 }
 0x6b6   : > { %vm684_vm8 = vcmp.eq.f32.partialorder %v681_v32, %v683_v13  ;;  %v689_v36 = vcvt.f32.s32 %v683_v13 }
 0x6b7   : > { %v685_v35 = vsel %vm684_vm8, %v680_v34, inf }
 0x6b8   : > { %686 = vmin.xlane.f32.xlu1 %v685_v35  ;;  %v690_v38 = vshll.u32 %v689_v36, 16 }
 0x745   : > { %v687_v37 = vpop.xlane.xlu1 %686 }
 0x746   : > { %v688_v39 = vcvt.f32.s32 %v687_v37 }
 0x748   : > { %v1337_v40 = vadd.s32 %v690_v38, %v688_v39 }
 0x74a   : > { %vm692_vm9 = vcmp.eq.s32.totalorder %v1295_v9, %v1337_v40 }
 0x74b   : > { %v710_v41 = vsel %vm692_vm9, inf, %v671_v26 }
 0x74c   : > { %v711_v42 = vsel %vm593_vm12, %v710_v41, inf }
 0x74d   : > { %712 = vmin.xlane.f32.xlu0 %v711_v42 }
 0x7da   : > { %v713_v43 = vpop.xlane.xlu0 %712 }
 0x7db   : > { %vm714_vm11 = vcmp.eq.f32.partialorder %v710_v41, %v713_v43  ;;  %747 = vst.msk [vmem:[#allocation2] sm:$0xff] %vm746_vm10, %v713_v43 }
 0x7dc   : > { %v715_v44 = vsel %vm714_vm11, %v1295_v9, 24  ;;  %vm1492_vm11 = vcmask 48168  }
 0x7dd   : > { %v716_v45 = vsel %vm593_vm12, %v715_v44, 2147483647 }
 0x7de   : > { %v718_v46 = vshra.s32 %v716_v45, 16  ;;  %v717_v48 = vand.u32 65535, %v716_v45 }
 0x7e0   : > { %v720_v47 = vcvt.s32.f32 %v718_v46  ;;  %v719_v50 = vcvt.s32.f32 %v717_v48 }
 0x7e2   : > { %721 = vmin.xlane.f32.xlu1 %v720_v47 }
 0x86f   : > { %v722_v49 = vpop.xlane.xlu1 %721 }
 0x870   : > { %vm723_vm14 = vcmp.eq.f32.partialorder %v720_v47, %v722_v49  ;;  %v728_v52 = vcvt.f32.s32 %v722_v49 }
 0x871   : > { %v724_v51 = vsel %vm723_vm14, %v719_v50, inf }
 0x872   : > { %725 = vmin.xlane.f32.xlu0 %v724_v51  ;;  %v729_v54 = vshll.u32 %v728_v52, 16 }
 0x8ff   : > { %v726_v53 = vpop.xlane.xlu0 %725 }
 0x900   : > { %v727_v55 = vcvt.f32.s32 %v726_v53 }
 0x902   : > { %v1348_v56 = vadd.s32 %v729_v54, %v727_v55 }
 0x904   : > { %vm731_vm15 = vcmp.eq.s32.totalorder %v1295_v9, %v1348_v56 }
 0x905   : > { %v749_v57 = vsel %vm731_vm15, inf, %v710_v41 }
 0x906   : > { %v750_v58 = vsel %vm593_vm12, %v749_v57, inf }
 0x907   : > { %751 = vmin.xlane.f32.xlu1 %v750_v58 }
 0x994   : > { %v752_v59 = vpop.xlane.xlu1 %751 }
 0x995   : > { %vm753_vm4 = vcmp.eq.f32.partialorder %v749_v57, %v752_v59  ;;  %786 = vst.msk [vmem:[#allocation2] sm:$0xff] %vm1494_vm2, %v752_v59 }
 0x996   : > { %v754_v60 = vsel %vm753_vm4, %v1295_v9, 24 }
 0x997   : > { %v755_v61 = vsel %vm593_vm12, %v754_v60, 2147483647 }
 0x998   : > { %v757_v62 = vshra.s32 %v755_v61, 16  ;;  %v756_v0 = vand.u32 65535, %v755_v61 }
 0x99a   : > { %v759_v63 = vcvt.s32.f32 %v757_v62  ;;  %v758_v2 = vcvt.s32.f32 %v756_v0 }
 0x99c   : > { %760 = vmin.xlane.f32.xlu0 %v759_v63 }
 0xa29   : > { %v761_v1 = vpop.xlane.xlu0 %760 }
 0xa2a   : > { %vm762_vm7 = vcmp.eq.f32.partialorder %v759_v63, %v761_v1  ;;  %v767_v4 = vcvt.f32.s32 %v761_v1 }
 0xa2b   : > { %v763_v3 = vsel %vm762_vm7, %v758_v2, inf }
 0xa2c   : > { %764 = vmin.xlane.f32.xlu1 %v763_v3  ;;  %v768_v6 = vshll.u32 %v767_v4, 16 }
 0xab9   : > { %v765_v5 = vpop.xlane.xlu1 %764 }
 0xaba   : > { %v766_v8 = vcvt.f32.s32 %v765_v5 }
 0xabc   : > { %v1359_v11 = vadd.s32 %v768_v6, %v766_v8 }
 0xabe   : > { %vm770_vm8 = vcmp.eq.s32.totalorder %v1295_v9, %v1359_v11 }
 0xabf   : > { %v788_v12 = vsel %vm770_vm8, inf, %v749_v57  ;;  %v589_v57 = vld [vmem:[#allocation3] sm:$0xff] }
 0xac0   : > { %v789_v14 = vsel %vm593_vm12, %v788_v12, inf }
 0xac1   : > { %790 = vmin.xlane.f32.xlu0 %v789_v14 }
 0xb4e   : > { %v791_v15 = vpop.xlane.xlu0 %790 }
 0xb4f   : > { %vm792_vm14 = vcmp.eq.f32.partialorder %v788_v12, %v791_v15  ;;  %825 = vst.msk [vmem:[#allocation2] sm:$0xff] %vm1492_vm11, %v791_v15 }
 0xb50   : > { %v793_v16 = vsel %vm792_vm14, %v1295_v9, 24  ;;  %vm1493_vm14 = vcmask 56368  }
 0xb51   : > { %v794_v17 = vsel %vm593_vm12, %v793_v16, 2147483647 }
 0xb52   : > { %v796_v18 = vshra.s32 %v794_v17, 16  ;;  %v795_v20 = vand.u32 65535, %v794_v17 }
 0xb54   : > { %v798_v19 = vcvt.s32.f32 %v796_v18  ;;  %v797_v22 = vcvt.s32.f32 %v795_v20 }
 0xb56   : > { %799 = vmin.xlane.f32.xlu1 %v798_v19 }
 0xbe3   : > { %v800_v21 = vpop.xlane.xlu1 %799 }
 0xbe4   : > { %vm801_vm4 = vcmp.eq.f32.partialorder %v798_v19, %v800_v21  ;;  %v806_v24 = vcvt.f32.s32 %v800_v21 }
 0xbe5   : > { %v802_v23 = vsel %vm801_vm4, %v797_v22, inf }
 0xbe6   : > { %803 = vmin.xlane.f32.xlu0 %v802_v23  ;;  %v807_v26 = vshll.u32 %v806_v24, 16 }
 0xc73   : > { %v804_v10 = vpop.xlane.xlu0 %803 }
 0xc74   : > { %v805_v27 = vcvt.f32.s32 %v804_v10 }
 0xc76   : > { %v1370_v28 = vadd.s32 %v807_v26, %v805_v27 }
 0xc78   : > { %vm809_vm7 = vcmp.eq.s32.totalorder %v1295_v9, %v1370_v28 }
 0xc79   : > { %v827_v29 = vsel %vm809_vm7, inf, %v788_v12 }
 0xc7a   : > { %v828_v30 = vsel %vm593_vm12, %v827_v29, inf }
 0xc7b   : > { %829 = vmin.xlane.f32.xlu1 %v828_v30 }
 0xd08   : > { %v830_v31 = vpop.xlane.xlu1 %829 }
 0xd09   : > { %vm831_vm4 = vcmp.eq.f32.partialorder %v827_v29, %v830_v31  ;;  %864 = vst.msk [vmem:[#allocation2] sm:$0xff] %vm1493_vm14, %v830_v31  ;;  %vm902_vm14 = vcmask 64568  }
 0xd0a   : > { %v832_v32 = vsel %vm831_vm4, %v1295_v9, 24 }
 0xd0b   : > { %v833_v33 = vsel %vm593_vm12, %v832_v32, 2147483647 }
 0xd0c   : > { %v835_v13 = vshra.s32 %v833_v33, 16  ;;  %v834_v35 = vand.u32 65535, %v833_v33 }
 0xd0e   : > { %v837_v34 = vcvt.s32.f32 %v835_v13  ;;  %v836_v37 = vcvt.s32.f32 %v834_v35 }
 0xd10   : > { %838 = vmin.xlane.f32.xlu0 %v837_v34 }
 0xd9d   : > { %v839_v36 = vpop.xlane.xlu0 %838 }
 0xd9e   : > { %vm840_vm11 = vcmp.eq.f32.partialorder %v837_v34, %v839_v36  ;;  %v845_v39 = vcvt.f32.s32 %v839_v36 }
 0xd9f   : > { %v841_v38 = vsel %vm840_vm11, %v836_v37, inf }
 0xda0   : > { %842 = vmin.xlane.f32.xlu1 %v841_v38  ;;  %v846_v42 = vshll.u32 %v845_v39, 16 }
 0xe2d   : > { %v843_v41 = vpop.xlane.xlu1 %842 }
 0xe2e   : > { %v844_v43 = vcvt.f32.s32 %v843_v41 }
 0xe30   : > { %v1381_v44 = vadd.s32 %v846_v42, %v844_v43 }
 0xe32   : > { %vm848_vm4 = vcmp.eq.s32.totalorder %v1295_v9, %v1381_v44 }
 0xe33   : > { %v866_v45 = vsel %vm848_vm4, inf, %v827_v29 }
 0xe34   : > { %v867_v46 = vsel %vm593_vm12, %v866_v45, inf }
 0xe35   : > { %868 = vmin.xlane.f32.xlu0 %v867_v46 }
 0xec2   : > { %v869_v47 = vpop.xlane.xlu0 %868 }
 0xec3   : > { %vm870_vm11 = vcmp.eq.f32.partialorder %v866_v45, %v869_v47  ;;  %903 = vst.msk [vmem:[#allocation2] sm:$0xff] %vm902_vm14, %v869_v47 }
 0xec4   : > { %v871_v48 = vsel %vm870_vm11, %v1295_v9, 24 }
 0xec5   : > { %v872_v49 = vsel %vm593_vm12, %v871_v48, 2147483647 }
 0xec6   : > { %v874_v50 = vshra.s32 %v872_v49, 16  ;;  %v873_v52 = vand.u32 65535, %v872_v49 }
 0xec8   : > { %v876_v51 = vcvt.s32.f32 %v874_v50  ;;  %v875_v54 = vcvt.s32.f32 %v873_v52 }
 0xeca   : > { %877 = vmin.xlane.f32.xlu1 %v876_v51 }
 0xedb   : > { %590 = vrot.lane.b32.xlu1 %v1295_v9, %s1196_s4 }
 0xf57   : > { %v1393_v53 = vpop.xlane.xlu1 %877 }
 0xf58   : > { %vm879_vm2 = vcmp.eq.f32.partialorder %v876_v51, %v1393_v53  ;;  %v884_v35 = vcvt.f32.s32 %v1393_v53 }
 0xf59   : > { %v880_v55 = vsel %vm879_vm2, %v875_v54, inf }
 0xf5a   : > { %881 = vmin.xlane.f32.xlu0 %v880_v55  ;;  %v885_v37 = vshll.u32 %v884_v35, 16 }
 0xf5b   : > { %v591_v58 = vpop.permute.xlu1 %590 }
 0xf5c   : > { %v592_v59 = vsel %vm211_vm3, %v589_v57, %v591_v58 }
 0xf5d   : > { %v732_v60 = vsel %vm731_vm15, %v592_v59, 0  ;;  %v615_v61 = vsel %vm614_vm0, %v592_v59, 0  ;;  %v654_v62 = vsel %vm653_vm5, %v592_v59, 0  ;;  %v693_v7 = vsel %vm692_vm9, %v592_v59, 0 }
 0xf5e   : > { %v733_v63 = vsel %vm593_vm12, %v732_v60, 0  ;;  %v616_v0 = vsel %vm593_vm12, %v615_v61, 0  ;;  %v655_v1 = vsel %vm593_vm12, %v654_v62, 0  ;;  %v694_v8 = vsel %vm593_vm12, %v693_v7, 0 }
 0xf5f   : > { %v735_v2 = vshrl.u32 %v733_v63, 16  ;;  %v618_v3 = vshrl.u32 %v616_v0, 16  ;;  %v657_v56 = vshrl.u32 %v655_v1, 16  ;;  %v617_v25 = vand.u32 65535, %v616_v0 }
 0xf60   : > { %v696_v14 = vshrl.u32 %v694_v8, 16  ;;  %v656_v16 = vand.u32 65535, %v655_v1  ;;  %v771_v17 = vsel %vm770_vm8, %v592_v59, 0  ;;  %v695_v19 = vand.u32 65535, %v694_v8 }
 0xf61   : > { %v737_v4 = vcvt.s32.f32 %v735_v2  ;;  %v620_v5 = vcvt.s32.f32 %v618_v3  ;;  %v659_v6 = vcvt.s32.f32 %v657_v56  ;;  %v619_v12 = vcvt.s32.f32 %v617_v25 }
 0xf62   : > { %v698_v15 = vcvt.s32.f32 %v696_v14  ;;  %v658_v18 = vcvt.s32.f32 %v656_v16  ;;  %v772_v40 = vsel %vm593_vm12, %v771_v17, 0  ;;  %v697_v20 = vcvt.s32.f32 %v695_v19 }
 0xf63   : > { %740 = vadd.xlane.f32.xlu1 %v737_v4  ;;  %623 = vadd.xlane.f32.xlu0 %v620_v5  ;;  %v774_v21 = vshrl.u32 %v772_v40, 16  ;;  %v810_v22 = vsel %vm809_vm7, %v592_v59, 0  ;;  %v734_v24 = vand.u32 65535, %v733_v63  ;;  %v849_v27 = vsel %vm848_vm4, %v592_v59, 0 }
 0xf64   : > { %v811_v10 = vsel %vm593_vm12, %v810_v22, 0  ;;  %v773_v30 = vand.u32 65535, %v772_v40  ;;  %v850_v31 = vsel %vm593_vm12, %v849_v27, 0 }
 0xf65   : > { %v776_v23 = vcvt.s32.f32 %v774_v21  ;;  %v736_v26 = vcvt.s32.f32 %v734_v24  ;;  %v813_v11 = vshrl.u32 %v811_v10, 16  ;;  %v852_v28 = vshrl.u32 %v850_v31, 16 }
 0xf66   : > { %v775_v32 = vcvt.s32.f32 %v773_v30  ;;  %v812_v13 = vand.u32 65535, %v811_v10  ;;  %v851_v48 = vand.u32 65535, %v850_v31 }
 0xf67   : > { %662 = vadd.xlane.f32.xlu0 %v659_v6  ;;  %v815_v29 = vcvt.s32.f32 %v813_v11  ;;  %v854_v33 = vcvt.s32.f32 %v852_v28 }
 0xf68   : > { %v814_v34 = vcvt.s32.f32 %v812_v13  ;;  %v853_v51 = vcvt.s32.f32 %v851_v48 }
 0xf6b   : > { %621 = vadd.xlane.f32.xlu0 %v619_v12 }
 0xf6f   : > { %701 = vadd.xlane.f32.xlu0 %v698_v15 }
 0xf73   : > { %660 = vadd.xlane.f32.xlu0 %v658_v18 }
 0xf77   : > { %699 = vadd.xlane.f32.xlu0 %v697_v20 }
 0xf7b   : > { %779 = vadd.xlane.f32.xlu0 %v776_v23 }
 0xf7f   : > { %738 = vadd.xlane.f32.xlu0 %v736_v26 }
 0xf83   : > { %818 = vadd.xlane.f32.xlu0 %v815_v29 }
 0xf87   : > { %777 = vadd.xlane.f32.xlu0 %v775_v32 }
 0xf8b   : > { %857 = vadd.xlane.f32.xlu0 %v854_v33 }
 0xf8f   : > { %816 = vadd.xlane.f32.xlu0 %v814_v34 }
 0xfe7   : > { %v882_v36 = vpop.xlane.xlu0 %881 }
 0xfe8   : > { %v883_v38 = vcvt.f32.s32 %v882_v36 }
 0xfea   : > { %v886_v39 = vadd.s32 %v885_v37, %v883_v38 }
 0xfec   : > { %vm887_vm0 = vcmp.eq.s32.totalorder %v1295_v9, %v886_v39 }
 0xfed   : > { %v888_v41 = vsel %vm887_vm0, %v592_v59, 0 }
 0xfee   : > { %v889_v42 = vsel %vm593_vm12, %v888_v41, 0  ;;  %vm1497_vm12 = vcmask 39968  }
 0xfef   : > { %v891_v43 = vshrl.u32 %v889_v42, 16  ;;  %v890_v44 = vand.u32 65535, %v889_v42 }
 0xff0   : > { %v624_v45 = vpop.xlane.xlu0 %623  ;;  %v741_v2 = vpop.xlane.xlu1 %740 }
 0xff1   : > { %v893_v46 = vcvt.s32.f32 %v891_v43  ;;  %v892_v47 = vcvt.s32.f32 %v890_v44  ;;  %v626_v50 = vcvt.f32.s32 %v624_v45  ;;  %v743_v5 = vcvt.f32.s32 %v741_v2 }
 0xff3   : > { %896 = vadd.xlane.f32.xlu0 %v893_v46  ;;  %894 = vadd.xlane.f32.xlu1 %v892_v47  ;;  %v627_v53 = vshll.u32 %v626_v50, 16  ;;  %v744_v7 = vshll.u32 %v743_v5, 16 }
 0xff4   : > { %v663_v49 = vpop.xlane.xlu0 %662 }
 0xff5   : > { %v665_v57 = vcvt.f32.s32 %v663_v49 }
 0xff7   : > { %855 = vadd.xlane.f32.xlu0 %v853_v51  ;;  %v666_v59 = vshll.u32 %v665_v57, 16 }
 0xff8   : > { %v622_v52 = vpop.xlane.xlu0 %621 }
 0xff9   : > { %v625_v54 = vcvt.f32.s32 %v622_v52 }
 0xffb   : > { %v628_v55 = vadd.s32 %v627_v53, %v625_v54 }
 0xffc   : > { %v702_v9 = vpop.xlane.xlu0 %701 }
 0xffd   : > { %631 = vst.msk [vmem:[#allocation3] sm:$0xff] %vm629_vm13, %v628_v55  ;;  %v704_v60 = vcvt.f32.s32 %v702_v9  ;;  %vm1498_vm13 = vcmask 48168  }
 0xfff   : > { %v705_v0 = vshll.u32 %v704_v60, 16 }
0x1000   : > { %v661_v58 = vpop.xlane.xlu0 %660 }
0x1001   : > { %v664_v61 = vcvt.f32.s32 %v661_v58 }
0x1003   : > { %v667_v62 = vadd.s32 %v666_v59, %v664_v61 }
0x1004   : > { %v700_v63 = vpop.xlane.xlu0 %699 }
0x1005   : > { %670 = vst.msk [vmem:[#allocation3] sm:$0xff] %vm668_vm1, %v667_v62  ;;  %v703_v1 = vcvt.f32.s32 %v700_v63  ;;  %vm1499_vm1 = vcmask 56368  }
0x1007   : > { %v706_v3 = vadd.s32 %v705_v0, %v703_v1 }
0x1008   : > { %v780_v4 = vpop.xlane.xlu0 %779 }
0x1009   : > { %709 = vst.msk [vmem:[#allocation3] sm:$0xff] %vm707_vm6, %v706_v3  ;;  %v782_v12 = vcvt.f32.s32 %v780_v4 }
0x100b   : > { %v783_v15 = vshll.u32 %v782_v12, 16 }
0x100c   : > { %v739_v56 = vpop.xlane.xlu0 %738 }
0x100d   : > { %v742_v6 = vcvt.f32.s32 %v739_v56 }
0x100f   : > { %v745_v25 = vadd.s32 %v744_v7, %v742_v6 }
0x1010   : > { %v819_v8 = vpop.xlane.xlu0 %818 }
0x1011   : > { %748 = vst.msk [vmem:[#allocation3] sm:$0xff] %vm746_vm10, %v745_v25  ;;  %v821_v19 = vcvt.f32.s32 %v819_v8 }
0x1013   : > { %v822_v20 = vshll.u32 %v821_v19, 16 }
0x1014   : > { %v778_v14 = vpop.xlane.xlu0 %777 }
0x1015   : > { %v781_v16 = vcvt.f32.s32 %v778_v14 }
0x1017   : > { %v784_v17 = vadd.s32 %v783_v15, %v781_v16 }
0x1018   : > { %v858_v18 = vpop.xlane.xlu0 %857 }
0x1019   : > { %787 = vst.msk [vmem:[#allocation3] sm:$0xff] %vm1497_vm12, %v784_v17  ;;  %v860_v24 = vcvt.f32.s32 %v858_v18 }
0x101b   : > { %v861_v29 = vshll.u32 %v860_v24, 16 }
0x101c   : > { %v817_v40 = vpop.xlane.xlu0 %816 }
0x101d   : > { %v820_v21 = vcvt.f32.s32 %v817_v40 }
0x101f   : > { %v823_v22 = vadd.s32 %v822_v20, %v820_v21 }
0x1021   : > { %826 = vst.msk [vmem:[#allocation3] sm:$0xff] %vm1498_vm13, %v823_v22 }
0x1080   : > { %v897_v23 = vpop.xlane.xlu0 %896  ;;  %v895_v26 = vpop.xlane.xlu1 %894 }
0x1081   : > { %v899_v10 = vcvt.f32.s32 %v897_v23  ;;  %v898_v31 = vcvt.f32.s32 %v895_v26 }
0x1083   : > { %v900_v11 = vshll.u32 %v899_v10, 16 }
0x1084   : > { %v856_v27 = vpop.xlane.xlu0 %855 }
0x1085   : > { %v859_v30 = vcvt.f32.s32 %v856_v27  ;;  %v901_v28 = vadd.s32 %v900_v11, %v898_v31 }
0x1087   : > { %v862_v32 = vadd.s32 %v861_v29, %v859_v30 }
0x1089   : > { %865 = vst.msk [vmem:[#allocation3] sm:$0xff] %vm1499_vm1, %v862_v32 }
0x108a   : > { %904 = vst.msk [vmem:[#allocation3] sm:$0xff] %vm902_vm14, %v901_v28 }
0x1091   : > { %v908_v33 = vld [vmem:[#allocation3] sm:$0xff] }
0x1092   : > { %909 = vst.msk [vmem:[%s189_s8] sm:$0xff] %vm211_vm3, %v908_v33 }
0x1093   : > { %1124 = shalt.err (!%p1121_p5)
}
0x1094   : > { %s1125_s27 = scalar_lea.hbm %s1441_s20, 128  ;;  %s1129_s30 = scalar_lea.hbm %s1491_s2, 256 }
0x1095   : > { %p1126_p6 = scmp.ne.s32.totalorder %s1441_s20, %s1125_s27  ;;  %p1130_p10 = scmp.lt.u32.totalorder %s1441_s20, %s1491_s2 }
0x1096   : > { %p1131_p11 = scmp.lt.u32.totalorder %s1129_s30, %s1125_s27  ;;  %p1133_p13 = scmp.lt.u32.totalorder %s1125_s27, %s1441_s20 }
0x1097   : > { %p1127_p7 = pnand %p1126_p6, %p1253_p4 }
0x1098   : > { %p1132_p12 = por %p1131_p11, %p1130_p10 }
0x1099   : > { %p1128_p9 = pneg %p1127_p7 }
0x109a   : > { %p1134_p0 = por %p1133_p13, %p1132_p12 }
0x109c   : > { %p1135_p1 = pnand %p1134_p0, %p1128_p9 }
0x109e   : > { %1138 = shalt.err (!%p1135_p1)
}
0x109f   : > { %1048 = dma.vmem_to_hbm [thread:$0]  (%p1253_p4), %s1443_s15, 128, %s1441_s20, %s911_s23  }
0x10a0 PF: > { %p1054_p2 = scmp.ge.s32.totalorder %s1189_s14, 2  ;;  %s937_s5 = sand.u32 1, %s1169_s9  }
0x10a1   : > { %s938_s6 = scalar_lea.sflag [#allocation5], %s937_s5 }
0x10a2   : > { %p1051_p3 = pnand %p1054_p2, %p1260_p8 }
0x10a4   : > { %1164 = dma.done.wait (!%p1051_p3), %s938_s6, 128  }
0x10a5   : > { %1166 = vsyncadd (!%p1051_p3), %s938_s6, 4294967168  ;;  %s15_s14 = sadd.s32 1, %s1189_s14   ;;  %s1500_s9 = smov %s1173_s10 }
0x10a6   : > { %p12_p5 = scmp.ge.s32.totalorder %s15_s14, 4   ;;  %s1501_s10 = smov %s1177_s11 }
0x10a7   : > { %s1502_s11 = smov %s1266_s22  ;;  %s1503_s12 = smov %s1185_s13 }
0x10a8   : > { %s1504_s13 = smov %s1506_s17  ;;  %14 = sbr.rel (!%p12_p5) target bundleno = 4 (0x4), region = 74 }
0x10af   :  { %943 = vsyncpa [#allocation5], 1 }
0x10b0   :  { %945 = vsyncpa [#allocation5 + $0x1], 1 }

</bundles_post_ra>
